<compile_context>
chip_gen: v5e
topology: v5e:2x2
jax: 0.10.0
libtpu: 0.0.40
codegen_flags: <defaults>
</compile_context>

<pallas_src>
import jax
import jax.numpy as jnp
from jax.experimental import pallas as pl
from jax.experimental.pallas import tpu as pltpu


def _cdiv(a, b):
    return -(-a // b)


def _round_up(x, m):
    return ((x + m - 1) // m) * m


def _dequant_kernel(scale_ref, zp_ref, q_ref, out_ref):
    # scale/zp are SMEM scalars; q_ref/out_ref are VMEM tiles.
    # Exact torch.dequantize math: (q - zero_point) * scale.
    x = q_ref[...].astype(jnp.float32)
    out_ref[...] = ((x - zp_ref[0]) * scale_ref[0]).astype(out_ref.dtype)


def dequantize(q, scale, zero_point, *, lane=1024, tile_rows=1024,
               out_dtype=jnp.float32, min_tiles=8):
    """Per-tensor dequantize of an integer-quantized tensor of any shape.

    q:          integer array (int8 for qint8, uint8 for quint8), any shape.
    scale:      per-tensor scale (python float / 0-d array).
    zero_point: per-tensor zero point (python int / 0-d array).
    lane:       max lane width of the internal slab (multiple of 128).
    tile_rows:  max row-tile size of the internal slab (multiple of 32).
    out_dtype:  float32 (torch semantics) or bfloat16 (opt-in, less HBM traffic).
    min_tiles:  target minimum number of grid steps for DMA pipelining.
    """
    assert lane % 128 == 0 and tile_rows % 32 == 0
    assert jnp.issubdtype(q.dtype, jnp.integer), "expected a quantized integer tensor"
    assert jnp.asarray(scale).size == 1 and jnp.asarray(zero_point).size == 1, \
        "per-tensor quantization only (scalar scale / zero_point)"

    orig_shape = q.shape
    n = int(q.size)
    in_itemsize = jnp.dtype(q.dtype).itemsize
    out_itemsize = jnp.dtype(out_dtype).itemsize

    scale_arr = jnp.asarray([scale], dtype=jnp.float32)
    zp_arr = jnp.asarray([zero_point], dtype=jnp.float32)

    # ---- lane-dense slab layout (no pad / no slice on the fast path) -------
    if n % 128 == 0:
        n_pad = n                       # fast path: pure reshape, zero extra traffic
    else:
        n_pad = _round_up(n, 128)       # rare fallback (see TODO above)
    L = 128
    for cand in range(min(lane, n_pad), 127, -128):
        if n_pad % cand == 0:
            L = cand
            break
    M = n_pad // L

    # ---- balanced row tiling ------------------------------------------------
    # Target several grid steps (pipelining / megacore), tiles sublane-aligned
    # (int8 packs (32,128)); the ragged last tile is handled by Pallas boundary
    # masking, so no row padding is ever materialized.
    SUB = 32
    if M <= SUB:
        TM = M                          # full extent (always legal)
    else:
        nt = max(_cdiv(M, tile_rows), min(min_tiles, _cdiv(M, SUB)))
        TM = min(_round_up(_cdiv(M, nt), SUB), M)
    grid = (_cdiv(M, TM),)

    q_flat = q.reshape(-1)
    if n_pad != n:
        q_flat = jnp.pad(q_flat, (0, n_pad - n))
    q2d = q_flat.reshape(M, L)

    out2d = pl.pallas_call(
        _dequant_kernel,
        out_shape=jax.ShapeDtypeStruct((M, L), out_dtype),
        grid=grid,
        in_specs=[
            pl.BlockSpec(memory_space=pltpu.SMEM),        # scale
            pl.BlockSpec(memory_space=pltpu.SMEM),        # zero_point
            pl.BlockSpec((TM, L), lambda i: (i, 0)),      # quantized tile
        ],
        out_specs=pl.BlockSpec((TM, L), lambda i: (i, 0)),
        compiler_params=pltpu.CompilerParams(
            dimension_semantics=("parallel",)),
        cost_estimate=pl.CostEstimate(
            flops=2 * n_pad,
            transcendentals=0,
            bytes_accessed=n_pad * (in_itemsize + out_itemsize)),
    )(scale_arr, zp_arr, q2d)

    if n_pad == n:
        return out2d.reshape(orig_shape)
    return out2d.reshape(-1)[:n].reshape(orig_shape)


if __name__ == "__main__":
    key = jax.random.PRNGKey(0)
    k1, k2, k3 = jax.random.split(key, 3)

    def ref_dequant(q, scale, zp):
        return (q.astype(jnp.float32) - jnp.float32(zp)) * jnp.float32(scale)

    # --- primary (module-consistent) shape: NCHW (2, 4, 16, 16) -------------
    N, C, H, W = 2, 4, 16, 16
    q = jax.random.randint(k1, (N, C, H, W), minval=-128, maxval=128,
                           dtype=jnp.int32).astype(jnp.int8)
    out = jax.block_until_ready(dequantize(q, 0.05, 3))
    assert out.shape == (N, C, H, W) and out.dtype == jnp.float32
    assert jnp.allclose(out, ref_dequant(q, 0.05, 3), rtol=1e-6, atol=1e-6), \
        "mismatch vs reference"

    # --- multi-tile grid (exercises pipelined tiling, rows divide evenly) ---
    q2 = jax.random.randint(k2, (2, 4, 32, 32), minval=-128, maxval=128,
                            dtype=jnp.int32).astype(jnp.int8)
    out2 = jax.block_until_ready(dequantize(q2, 0.125, -7, lane=128, tile_rows=32))
    assert jnp.allclose(out2, ref_dequant(q2, 0.125, -7), rtol=1e-6, atol=1e-6), \
        "tiled mismatch"

    # --- ragged row count: partial last tile handled in-kernel (no pad) -----
    q3 = jax.random.randint(k3, (3, 24, 128), minval=-128, maxval=128,
                            dtype=jnp.int32).astype(jnp.int8)
    out3 = jax.block_until_ready(dequantize(q3, 0.02, 5, lane=128, tile_rows=32))
    assert jnp.allclose(out3, ref_dequant(q3, 0.02, 5), rtol=1e-6, atol=1e-6), \
        "ragged-tile mismatch"

    print("KERNEL_OK")
</pallas_src>

<mosaic_0001>
module attributes {stable_mosaic.version = 11 : i64} {
  func.func @_dequant_kernel(%arg0: i32, %arg1: memref<1xf32, #tpu.memory_space<smem>>, %arg2: memref<1xf32, #tpu.memory_space<smem>>, %arg3: memref<2x1024xi8, #tpu.memory_space<vmem>>, %arg4: memref<2x1024xf32, #tpu.memory_space<vmem>>) attributes {dimension_semantics = [#tpu.dimension_semantics<parallel>], iteration_bounds = array<i64: 1>, scalar_prefetch = 0 : i64, scratch_operands = 0 : i64, tpu.core_type = #tpu.core_type<tc>, window_params = [{transform_indices = @transform_0, window_bounds = array<i64: 1>}, {transform_indices = @transform_1, window_bounds = array<i64: 1>}, {transform_indices = @transform_2, window_bounds = array<i64: 2, 1024>}, {transform_indices = @transform_3, window_bounds = array<i64: 2, 1024>}]} {
    %c0 = arith.constant 0 : index
    %c0_0 = arith.constant 0 : index
    %0 = vector.load %arg3[%c0, %c0_0] : memref<2x1024xi8, #tpu.memory_space<vmem>>, vector<2x1024xi8>
    %1 = arith.sitofp %0 : vector<2x1024xi8> to vector<2x1024xf32>
    %c0_1 = arith.constant 0 : index
    %2 = memref.load %arg2[%c0_1] : memref<1xf32, #tpu.memory_space<smem>>
    %3 = vector.broadcast %2 : f32 to vector<2x1024xf32>
    %4 = arith.subf %1, %3 : vector<2x1024xf32>
    %c0_2 = arith.constant 0 : index
    %5 = memref.load %arg1[%c0_2] : memref<1xf32, #tpu.memory_space<smem>>
    %6 = vector.broadcast %5 : f32 to vector<2x1024xf32>
    %7 = arith.mulf %4, %6 : vector<2x1024xf32>
    %c0_3 = arith.constant 0 : index
    %c0_4 = arith.constant 0 : index
    %8 = vector.load %arg4[%c0_3, %c0_4] : memref<2x1024xf32, #tpu.memory_space<vmem>>, vector<2x1024xf32>
    tpu.vector_store %arg4[%c0_3, %c0_4], %7 {strides = array<i32>} : memref<2x1024xf32, #tpu.memory_space<vmem>>, vector<2x1024xf32>,
    return
  }
  func.func @transform_0(%arg0: i32) -> i32 {
    %c0_i32 = arith.constant 0 : i32
    %c0_i32_0 = arith.constant 0 : i32
    return %c0_i32 : i32
  }
  func.func @transform_1(%arg0: i32) -> i32 {
    %c0_i32 = arith.constant 0 : i32
    %c0_i32_0 = arith.constant 0 : i32
    return %c0_i32 : i32
  }
  func.func @transform_2(%arg0: i32) -> (i32, i32) {
    %c0_i32 = arith.constant 0 : i32
    %c0_i32_0 = arith.constant 0 : i32
    return %arg0, %c0_i32 : i32, i32
  }
  func.func @transform_3(%arg0: i32) -> (i32, i32) {
    %c0_i32 = arith.constant 0 : i32
    %c0_i32_0 = arith.constant 0 : i32
    return %arg0, %c0_i32 : i32, i32
  }
}

</mosaic_0001>

<bundles_post_ra>
// kernel: tpu_custom_call.1
= control target key start
LH: loop header
LB: loop body
LE: loop exit
PB: predicated region body
PF: predicated region fallthrough
CT: control target
= control target key end

     0   :  { %10 = vsyncpa [#allocation5], 0  ;;  %s182_s0 = inlined_call_operand.<no memory space> [shape: f32[1], index: 0, kind: input, shape index: {}]   ;;  %s183_s1 = inlined_call_operand.<no memory space> [shape: f32[1], index: 1, kind: input, shape index: {}]   ;;  %s184_s2 = inlined_call_operand.hbm [shape: s8[2,1024], index: 2, kind: input, shape index: {}]   ;;  %s185_s3 = inlined_call_operand.hbm [shape: f32[2,1024], index: 3, kind: output, shape index: {}]  }
   0x1   :  { %11 = vsyncpa [#allocation6], 0  ;;  %s21_s14 = sshll.u32 %s184_s2, 4  ;;  %s146_s15 = smov [#allocation4]   ;;  %s22_s14 = int_to_ptr.hbm [resolvable:$true] %s21_s14 }
   0x2   :  { %s23_s16 = sshll.u32 %s146_s15, 4  ;;  %s24_s16 = int_to_ptr.vmem [resolvable:$true] %s23_s16 }
   0x3   :  { %26 = dma.hbm_to_vmem [thread:$0]  %s22_s14, 128, %s24_s16, [#allocation5]  }
   0x4   :  { %142 = dma.done.wait [#allocation5], 128  }
   0x5   :  { %143 = vsyncadd [#allocation5], 4294967168  ;;  %v31_v0 = vld [vmem:[#allocation4] sm:$0xff]  ;;  %v41_v5 = vstv %s183_s1  ;;  %v47_v10 = vstv %s182_s0  ;;  %vm62_vm0 = vcmask 1041408   ;;  %vm64_vm1 = vcmask 1045508   ;;  %s147_s1 = smov [#allocation7]  }
   0x6   :  { %v32_v1 = vunpack.c.0.s8 %v31_v0  ;;  %v33_v2 = vunpack.c.1.s8 %v31_v0  ;;  %v34_v3 = vunpack.c.2.s8 %v31_v0  ;;  %v35_v4 = vunpack.c.3.s8 %v31_v0  ;;  %s80_s20 = sshll.u32 %s147_s1, 4  ;;  %s82_s0 = sshll.u32 %s185_s3, 4  ;;  %s81_s20 = int_to_ptr.vmem [resolvable:$true] %s80_s20  ;;  %s83_s0 = int_to_ptr.hbm [resolvable:$true] %s82_s0 }
   0x7   :  { %vm66_vm2 = vcmask 1043456  }
   0x8   :  { %v36_v6 = vcvt.s32.f32 %v32_v1  ;;  %v37_v7 = vcvt.s32.f32 %v33_v2  ;;  %v38_v8 = vcvt.s32.f32 %v34_v3  ;;  %v39_v9 = vcvt.s32.f32 %v35_v4 }
   0xa   :  { %v42_v11 = vsub.f32 %v36_v6, %v41_v5  ;;  %v43_v12 = vsub.f32 %v37_v7, %v41_v5  ;;  %v44_v13 = vsub.f32 %v38_v8, %v41_v5  ;;  %v45_v14 = vsub.f32 %v39_v9, %v41_v5 }
   0xc   :  { %v48_v15 = vmul.f32 %v47_v10, %v42_v11  ;;  %v49_v16 = vmul.f32 %v47_v10, %v43_v12  ;;  %v50_v17 = vmul.f32 %v47_v10, %v44_v13  ;;  %v51_v18 = vmul.f32 %v47_v10, %v45_v14 }
   0xe   :  { %v56_v19 = vrot.slane %v48_v15, 2  ;;  %v57_v20 = vrot.slane %v49_v16, 4  ;;  %v58_v21 = vrot.slane %v49_v16, 6  ;;  %v59_v22 = vrot.slane %v50_v17, 2 }
   0xf   :  { %v60_v23 = vrot.slane %v51_v18, 4  ;;  %v61_v24 = vrot.slane %v51_v18, 6 }
  0x10   :  { %v63_v25 = vsel %vm62_vm0, %v48_v15, %v56_v19  ;;  %v65_v26 = vsel %vm64_vm1, %v57_v20, %v58_v21  ;;  %v68_v27 = vsel %vm62_vm0, %v50_v17, %v59_v22 }
  0x11   :  { %v67_v28 = vsel %vm66_vm2, %v63_v25, %v65_v26  ;;  %v69_v29 = vsel %vm64_vm1, %v60_v23, %v61_v24 }
  0x12   :  { %73 = vst [vmem:[#allocation7] sm:$0xff] %v67_v28  ;;  %v70_v30 = vsel %vm66_vm2, %v68_v27, %v69_v29 }
  0x13   :  { %74 = vst [vmem:[#allocation7 + $0x8] sm:$0xff] %v70_v30 }
  0x14   :  { %85 = dma.vmem_to_hbm [thread:$0]  %s81_s20, 256, %s83_s0, [#allocation6]  }
  0x15   :  { %144 = dma.done.wait [#allocation6], 256  }
  0x16   :  { %145 = vsyncadd [#allocation6], 4294967040 }
  0x17   :  { %90 = vsyncpa [#allocation5], 1 }
  0x18   :  { %91 = vsyncpa [#allocation6], 1 }

</bundles_post_ra>
